<compile_context>
chip_gen: v6e
topology: v6e:2x2x1
jax: 0.10.0
libtpu: 0.0.40
codegen_flags: <defaults>
</compile_context>

<pallas_src>
import jax
import jax.numpy as jnp
from jax.experimental import pallas as pl
from jax.experimental.pallas import tpu as pltpu


def _classhead_kernel(x_ref, w_ref, b_ref, o_ref):
    # x_ref: (nb, C, T) activation tile (lane axis = spatial positions)
    # w_ref: (O, C)     resident weights
    # b_ref: (O, 1)     resident bias
    # o_ref: (nb, O, T) lane-dense output tile
    w = w_ref[...]
    b = b_ref[...]
    for n in range(x_ref.shape[0]):          # nb is small and static
        acc = jnp.dot(w, x_ref[n], preferred_element_type=jnp.float32)
        o_ref[n] = (acc + b).astype(o_ref.dtype)


def _pick_tiling(N, C, HW, itemsize, target_bytes=4 * 1024 * 1024):
    """Pick (batch block nb, spatial tile T) aiming at ~target_bytes of
    activation per grid step; T is a multiple of 128 (or the full extent)."""
    per_batch = C * HW * itemsize
    if N * per_batch <= target_bytes and N <= 8:
        return N, HW                      # whole problem in one grid step
    if per_batch <= target_bytes:
        return 1, HW                      # one image per step, full extent
    lanes = max(128, (target_bytes // (C * itemsize)) // 128 * 128)
    return 1, int(min(lanes, HW))


def class_head_forward(x_nchw, weight_oc, bias_o, num_anchors=2,
                       batch_block=None, tile_hw=None):
    """x_nchw: (N, C, H, W). weight_oc: (O, C) (1x1 conv weight squeezed).
    bias_o: (O,). Returns (N, H*W*num_anchors, 2), matching PyTorch ClassHead.
    batch_block / tile_hw override the adaptive tiling (used in tests)."""
    N, C, H, W = x_nchw.shape
    O = weight_oc.shape[0]
    assert O == num_anchors * 2

    HW = H * W
    itemsize = jnp.dtype(x_nchw.dtype).itemsize

    nb, thw = _pick_tiling(N, C, HW, itemsize)
    if batch_block is not None:
        nb = batch_block
    if tile_hw is not None:
        thw = tile_hw
    assert N % nb == 0

    # Pure view: NCHW row-major is already (N, C, H*W). No HBM transpose.
    x3d = x_nchw.reshape(N, C, HW)
    b2d = bias_o.reshape(O, 1)

    grid = (N // nb, pl.cdiv(HW, thw))

    cost = pl.CostEstimate(
        flops=2 * N * HW * C * O,
        transcendentals=0,
        bytes_accessed=itemsize * (N * HW * (C + O) + O * (C + 1)),
    )

    out3d = pl.pallas_call(
        _classhead_kernel,
        out_shape=jax.ShapeDtypeStruct((N, O, HW), x_nchw.dtype),
        grid_spec=pltpu.PrefetchScalarGridSpec(
            num_scalar_prefetch=0,
            grid=grid,
            in_specs=[
                # stream (nb, C, thw) activation tiles
                pl.BlockSpec((nb, C, thw), lambda n, t: (n, 0, t)),
                # weights / bias stay resident in VMEM across the whole grid
                pl.BlockSpec((O, C), lambda n, t: (0, 0)),
                pl.BlockSpec((O, 1), lambda n, t: (0, 0)),
            ],
            out_specs=pl.BlockSpec((nb, O, thw), lambda n, t: (n, 0, t)),
        ),
        compiler_params=pltpu.CompilerParams(
            dimension_semantics=("parallel", "parallel"),
            vmem_limit_bytes=32 * 1024 * 1024,
        ),
        cost_estimate=cost,
    )(x3d, weight_oc, b2d)

    # Cheap output permute on a buffer 16x smaller than the input:
    # (N, O, HW) -> (N, HW, O) == (N, H, W, A*2) -> (N, H*W*A, 2)
    out = jnp.transpose(out3d, (0, 2, 1))
    return out.reshape(N, HW * num_anchors, 2)


if __name__ == "__main__":
    # Module defaults: inchannels=64, num_anchors=2 -> conv 64 -> 4 channels
    inchannels, num_anchors = 64, 2
    O = num_anchors * 2

    key = jax.random.PRNGKey(0)
    kx, kw, kb = jax.random.split(key, 3)
    # Conv2d weight shape is (O, C, 1, 1); the 1x1 spatial dims are squeezed.
    weight = 0.05 * jax.random.normal(kw, (O, inchannels), dtype=jnp.float32)
    bias = 0.01 * jax.random.normal(kb, (O,), dtype=jnp.float32)

    def reference(x):
        r = jnp.einsum("nchw,oc->nhwo", x, weight) + bias
        return r.reshape(x.shape[0], -1, 2)

    # 1) Default adaptive tiling: tiny level -> whole batch in one grid step.
    N, H, W = 2, 16, 16
    x = jax.random.normal(kx, (N, inchannels, H, W), dtype=jnp.float32)
    out = jax.block_until_ready(
        class_head_forward(x, weight, bias, num_anchors=num_anchors))
    assert out.shape == (N, H * W * num_anchors, 2)
    assert jnp.allclose(out, reference(x), atol=1e-4, rtol=1e-4)

    # 2) Forced small tile on a non-multiple spatial size (20x20=400, tile 256)
    #    to lock in the ragged-last-block path (padded lanes computed on
    #    garbage but dropped at the output write).
    H2 = W2 = 20
    x2 = jax.random.normal(kx, (N, inchannels, H2, W2), dtype=jnp.float32)
    out2 = jax.block_until_ready(
        class_head_forward(x2, weight, bias, num_anchors=num_anchors,
                           batch_block=1, tile_hw=256))
    assert out2.shape == (N, H2 * W2 * num_anchors, 2)
    assert jnp.allclose(out2, reference(x2), atol=1e-4, rtol=1e-4)

    print("KERNEL_OK")
</pallas_src>

<mosaic_0001>
module attributes {stable_mosaic.version = 11 : i64} {
  func.func @_classhead_kernel(%arg0: i32, %arg1: i32, %arg2: memref<2x64x256xf32, #tpu.memory_space<vmem>>, %arg3: memref<4x64xf32, #tpu.memory_space<vmem>>, %arg4: memref<4x1xf32, #tpu.memory_space<vmem>>, %arg5: memref<2x4x256xf32, #tpu.memory_space<vmem>>) attributes {dimension_semantics = [#tpu.dimension_semantics<parallel>, #tpu.dimension_semantics<parallel>], iteration_bounds = array<i64: 1, 1>, scalar_prefetch = 0 : i64, scratch_operands = 0 : i64, tpu.core_type = #tpu.core_type<tc>, window_params = [{transform_indices = @transform_0, window_bounds = array<i64: 2, 64, 256>}, {pipeline_mode = #tpu.pipeline_mode<synchronous>, transform_indices = @transform_1, window_bounds = array<i64: 4, 64>}, {pipeline_mode = #tpu.pipeline_mode<synchronous>, transform_indices = @transform_2, window_bounds = array<i64: 4, 1>}, {transform_indices = @transform_3, window_bounds = array<i64: 2, 4, 256>}]} {
    %c0 = arith.constant 0 : index
    %c0_0 = arith.constant 0 : index
    %0 = vector.load %arg3[%c0, %c0_0] : memref<4x64xf32, #tpu.memory_space<vmem>>, vector<4x64xf32>
    %c0_1 = arith.constant 0 : index
    %c0_2 = arith.constant 0 : index
    %1 = vector.load %arg4[%c0_1, %c0_2] : memref<4x1xf32, #tpu.memory_space<vmem>>, vector<4x1xf32>
    %c0_3 = arith.constant 0 : index
    %c0_4 = arith.constant 0 : index
    %c0_5 = arith.constant 0 : index
    %2 = vector.load %arg2[%c0_3, %c0_4, %c0_5] : memref<2x64x256xf32, #tpu.memory_space<vmem>>, vector<1x64x256xf32>
    %3 = vector.shape_cast %2 : vector<1x64x256xf32> to vector<64x256xf32>
    %cst = arith.constant dense<0.000000e+00> : vector<4x256xf32>
    %4 = tpu.matmul %0, %3, %cst {dimension_numbers = #tpu.dot_dimension_numbers<[1], [0], [0], [1], [0, 0, 1, 1], [], []>} : vector<4x64xf32>, vector<64x256xf32>, vector<4x256xf32> -> vector<4x256xf32>
    %5 = vector.broadcast %1 : vector<4x1xf32> to vector<4x256xf32>
    %6 = arith.addf %4, %5 : vector<4x256xf32>
    %c0_6 = arith.constant 0 : index
    %c0_7 = arith.constant 0 : index
    %c0_8 = arith.constant 0 : index
    %7 = vector.load %arg5[%c0_6, %c0_7, %c0_8] : memref<2x4x256xf32, #tpu.memory_space<vmem>>, vector<1x4x256xf32>
    %8 = vector.shape_cast %7 : vector<1x4x256xf32> to vector<4x256xf32>
    %9 = vector.shape_cast %6 : vector<4x256xf32> to vector<1x4x256xf32>
    tpu.vector_store %arg5[%c0_6, %c0_7, %c0_8], %9 {strides = array<i32>} : memref<2x4x256xf32, #tpu.memory_space<vmem>>, vector<1x4x256xf32>,
    %c1 = arith.constant 1 : index
    %c0_9 = arith.constant 0 : index
    %c0_10 = arith.constant 0 : index
    %10 = vector.load %arg2[%c1, %c0_9, %c0_10] : memref<2x64x256xf32, #tpu.memory_space<vmem>>, vector<1x64x256xf32>
    %11 = vector.shape_cast %10 : vector<1x64x256xf32> to vector<64x256xf32>
    %cst_11 = arith.constant dense<0.000000e+00> : vector<4x256xf32>
    %12 = tpu.matmul %0, %11, %cst_11 {dimension_numbers = #tpu.dot_dimension_numbers<[1], [0], [0], [1], [0, 0, 1, 1], [], []>} : vector<4x64xf32>, vector<64x256xf32>, vector<4x256xf32> -> vector<4x256xf32>
    %13 = vector.broadcast %1 : vector<4x1xf32> to vector<4x256xf32>
    %14 = arith.addf %12, %13 : vector<4x256xf32>
    %c1_12 = arith.constant 1 : index
    %c0_13 = arith.constant 0 : index
    %c0_14 = arith.constant 0 : index
    %15 = vector.load %arg5[%c1_12, %c0_13, %c0_14] : memref<2x4x256xf32, #tpu.memory_space<vmem>>, vector<1x4x256xf32>
    %16 = vector.shape_cast %15 : vector<1x4x256xf32> to vector<4x256xf32>
    %17 = vector.shape_cast %14 : vector<4x256xf32> to vector<1x4x256xf32>
    tpu.vector_store %arg5[%c1_12, %c0_13, %c0_14], %17 {strides = array<i32>} : memref<2x4x256xf32, #tpu.memory_space<vmem>>, vector<1x4x256xf32>,
    return
  }
  func.func @transform_0(%arg0: i32, %arg1: i32) -> (i32, i32, i32) {
    %c0_i32 = arith.constant 0 : i32
    %c0_i32_0 = arith.constant 0 : i32
    return %arg0, %c0_i32, %arg1 : i32, i32, i32
  }
  func.func @transform_1(%arg0: i32, %arg1: i32) -> (i32, i32) {
    %c0_i32 = arith.constant 0 : i32
    %c0_i32_0 = arith.constant 0 : i32
    %c0_i32_1 = arith.constant 0 : i32
    return %c0_i32, %c0_i32_0 : i32, i32
  }
  func.func @transform_2(%arg0: i32, %arg1: i32) -> (i32, i32) {
    %c0_i32 = arith.constant 0 : i32
    %c0_i32_0 = arith.constant 0 : i32
    %c0_i32_1 = arith.constant 0 : i32
    return %c0_i32, %c0_i32_0 : i32, i32
  }
  func.func @transform_3(%arg0: i32, %arg1: i32) -> (i32, i32, i32) {
    %c0_i32 = arith.constant 0 : i32
    %c0_i32_0 = arith.constant 0 : i32
    return %arg0, %c0_i32, %arg1 : i32, i32, i32
  }
}

</mosaic_0001>

<bundles_post_ra>
// kernel: tpu_custom_call.1
= control target key start
LH: loop header
LB: loop body
LE: loop exit
PB: predicated region body
PF: predicated region fallthrough
CT: control target
= control target key end

     0   :  { %8 = vsyncpa [#allocation3], 0  ;;  %s338_s0 = inlined_call_operand.hbm [shape: f32[2,64,256], index: 0, kind: input, shape index: {}]   ;;  %s339_s1 = inlined_call_operand.vmem [shape: f32[4,64], index: 1, kind: input, shape index: {}]   ;;  %s340_s2 = inlined_call_operand.vmem [shape: f32[4,1], index: 2, kind: input, shape index: {}]   ;;  %s341_s3 = inlined_call_operand.hbm [shape: f32[2,4,256], index: 3, kind: output, shape index: {}]  }
   0x1   :  { %9 = vsyncpa [#allocation4], 0  ;;  %s298_s12 = smov [#allocation2]  }
   0x2   :  { %s15_s13 = sshll.u32 %s298_s12, 4  ;;  %s16_s13 = int_to_ptr.vmem [resolvable:$true] %s15_s13 }
   0x3   :  { %s262_s14 = scalar_lea.vmem %s16_s13, 4096  ;;  %p267_p1 = scmp.lt.s32.totalorder %s16_s13, %s16_s13 }
   0x4   :  { %p263_p0 = scmp.ne.s32.totalorder %s16_s13, %s262_s14  ;;  %p268_p2 = scmp.lt.s32.totalorder %s262_s14, %s262_s14 }
   0x6   :  { %p269_p3 = por %p268_p2, %p267_p1 }
   0x8   :  { %p270_p4 = pnand %p269_p3, %p263_p0 }
   0xa   :  { %273 = shalt.err (!%p270_p4)
}
   0xb   :  { %s299_s15 = smov 256   ;;  %s300_s16 = smov 16  }
   0xc   :  { %21 = dma.hbm_to_vmem [thread:$0]  %s338_s0, 4096, %s16_s13, [#allocation3], %s299_s15, %s299_s15, %s300_s16  }
   0xd   :  { %294 = dma.done.wait [#allocation3], 4096  }
   0xe   :  { %295 = vsyncadd [#allocation3], 4294963200  ;;  %v301_v0 = vmov 0.0   ;;  %v302_v1 = vmov 0   ;;  %v46_v2 = vld [vmem:[#allocation2 + $0x78] sm:$0xff]  ;;  %v45_v4 = vld [vmem:[#allocation2 + $0x70] sm:$0xff] }
   0xf   :  { %120 = vmatprep.mubr.f32.mxu0 %v301_v0  ;;  %213 = vmatprep.mubr.f32.mxu1 %v301_v0  ;;  %v148_v3 = vld [vmem:[#allocation2 + $0xf8] sm:$0xff]  ;;  %v147_v5 = vld [vmem:[#allocation2 + $0xf0] sm:$0xff]  ;;  %v44_v6 = vld [vmem:[#allocation2 + $0x68] sm:$0xff]  ;;  %vm52_vm0 = vcmask 523264   ;;  %s303_s22 = smov [#allocation5]  }
  0x10   :  { %253 = vset.pattern.permute.xlu0 %v302_v1  ;;  %72 = vmatprep.subr.mxu0 %v46_v2  ;;  %v146_v7 = vld [vmem:[#allocation2 + $0xe8] sm:$0xff]  ;;  %v43_v8 = vld [vmem:[#allocation2 + $0x60] sm:$0xff]  ;;  %v42_v10 = vld [vmem:[#allocation2 + $0x58] sm:$0xff]  ;;  %s231_s23 = sshll.u32 %s303_s22, 4  ;;  %s232_s23 = int_to_ptr.vmem [resolvable:$true] %s231_s23 }
  0x11   :  { %165 = vmatprep.subr.mxu1 %v148_v3  ;;  %73 = vmatpush1.msra.mxu0 %v45_v4  ;;  %v145_v9 = vld [vmem:[#allocation2 + $0xe0] sm:$0xff]  ;;  %v144_v11 = vld [vmem:[#allocation2 + $0xd8] sm:$0xff]  ;;  %v41_v12 = vld [vmem:[#allocation2 + $0x50] sm:$0xff]  ;;  %p279_p6 = scmp.lt.s32.totalorder %s232_s23, %s232_s23 }
  0x12   :  { %166 = vmatpush1.msra.mxu1 %v147_v5  ;;  %74 = vmatprep.subr.mxu0 %v44_v6  ;;  %v143_v13 = vld [vmem:[#allocation2 + $0xd0] sm:$0xff]  ;;  %v40_v14 = vld [vmem:[#allocation2 + $0x48] sm:$0xff]  ;;  %v39_v16 = vld [vmem:[#allocation2 + $0x40] sm:$0xff] }
  0x13   :  { %167 = vmatprep.subr.mxu1 %v146_v7  ;;  %75 = vmatpush1.msra.mxu0 %v43_v8  ;;  %v142_v15 = vld [vmem:[#allocation2 + $0xc8] sm:$0xff]  ;;  %v141_v17 = vld [vmem:[#allocation2 + $0xc0] sm:$0xff]  ;;  %v38_v18 = vld [vmem:[#allocation2 + $0x38] sm:$0xff] }
  0x14   :  { %168 = vmatpush1.msra.mxu1 %v145_v9  ;;  %76 = vmatprep.subr.mxu0 %v42_v10  ;;  %v140_v19 = vld [vmem:[#allocation2 + $0xb8] sm:$0xff]  ;;  %v37_v20 = vld [vmem:[#allocation2 + $0x30] sm:$0xff]  ;;  %v36_v22 = vld [vmem:[#allocation2 + $0x28] sm:$0xff] }
  0x15   :  { %169 = vmatprep.subr.mxu1 %v144_v11  ;;  %77 = vmatpush1.msra.mxu0 %v41_v12  ;;  %v139_v21 = vld [vmem:[#allocation2 + $0xb0] sm:$0xff]  ;;  %v138_v23 = vld [vmem:[#allocation2 + $0xa8] sm:$0xff]  ;;  %v35_v24 = vld [vmem:[#allocation2 + $0x20] sm:$0xff] }
  0x16   :  { %170 = vmatpush1.msra.mxu1 %v143_v13  ;;  %78 = vmatprep.subr.mxu0 %v40_v14  ;;  %v137_v25 = vld [vmem:[#allocation2 + $0xa0] sm:$0xff]  ;;  %v34_v26 = vld [vmem:[#allocation2 + $0x18] sm:$0xff]  ;;  %v33_v28 = vld [vmem:[#allocation2 + $0x10] sm:$0xff] }
  0x17   :  { %171 = vmatprep.subr.mxu1 %v142_v15  ;;  %79 = vmatpush1.msra.mxu0 %v39_v16  ;;  %v136_v27 = vld [vmem:[#allocation2 + $0x98] sm:$0xff]  ;;  %v135_v29 = vld [vmem:[#allocation2 + $0x90] sm:$0xff]  ;;  %v32_v30 = vld [vmem:[#allocation2 + $0x8] sm:$0xff] }
  0x18   :  { %172 = vmatpush1.msra.mxu1 %v141_v17  ;;  %80 = vmatprep.subr.mxu0 %v38_v18  ;;  %v134_v31 = vld [vmem:[#allocation2 + $0x88] sm:$0xff]  ;;  %v31_v32 = vld [vmem:[#allocation2] sm:$0xff] }
  0x19   :  { %173 = vmatprep.subr.mxu1 %v140_v19  ;;  %81 = vmatpush1.msra.mxu0 %v37_v20  ;;  %v133_v33 = vld [vmem:[#allocation2 + $0x80] sm:$0xff] }
  0x1a   :  { %174 = vmatpush1.msra.mxu1 %v139_v21  ;;  %82 = vmatprep.subr.mxu0 %v36_v22  ;;  %v29_v34 = vld [vmem:[%s339_s1] sm:$0xf]  ;;  %s274_s1 = scalar_lea.vmem %s232_s23, 256 }
  0x1b   :  { %175 = vmatprep.subr.mxu1 %v138_v23  ;;  %83 = vmatpush1.msra.mxu0 %v35_v24  ;;  %v30_v35 = vld [vmem:[%s340_s2] sm:$0xf]  ;;  %p275_p5 = scmp.ne.s32.totalorder %s232_s23, %s274_s1  ;;  %p280_p7 = scmp.lt.s32.totalorder %s274_s1, %s274_s1 }
  0x1c   :  { %176 = vmatpush1.msra.mxu1 %v137_v25  ;;  %84 = vmatprep.subr.mxu0 %v34_v26 }
  0x1d   :  { %177 = vmatprep.subr.mxu1 %v136_v27  ;;  %85 = vmatpush1.msra.mxu0 %v33_v28  ;;  %p281_p8 = por %p280_p7, %p279_p6 }
  0x1e   :  { %178 = vmatpush1.msra.mxu1 %v135_v29  ;;  %86 = vmatprep.subr.mxu0 %v32_v30 }
  0x1f   :  { %179 = vmatprep.subr.mxu1 %v134_v31  ;;  %87 = vmatpush1.msra.mxu0 %v31_v32  ;;  %p282_p9 = pnand %p281_p8, %p275_p5 }
  0x20   :  { %180 = vmatpush1.msra.mxu1 %v133_v33  ;;  %243 = vmatmul.mubr.msk.f32.vlgmr.msra.gmra.mxu0 %vm52_vm0, %v29_v34 }
  0x21   :  { %244 = vmatmul.mubr.msk.f32.vlgmr.msra.gmra.mxu1 %vm52_vm0, %v29_v34  ;;  %49 = vperm.xlu0 %253, %v30_v35  }
  0x9c   :  { %v50_v36 = vpop.permute.xlu0 %49 }
  0xe0   :  { %v122_v37 = vpop.f32.mrf.mxu0 }
  0xe1   :  { %v215_v38 = vpop.f32.mrf.mxu1  ;;  %v123_v41 = vadd.f32 %v122_v37, %v50_v36 }
  0xe2   :  { %v124_v39 = vpop.f32.mrf.mxu0  ;;  %v216_v42 = vadd.f32 %v215_v38, %v50_v36 }
  0xe3   :  { %v217_v40 = vpop.f32.mrf.mxu1  ;;  %v125_v43 = vadd.f32 %v124_v39, %v50_v36 }
  0xe4   :  { %v218_v44 = vadd.f32 %v217_v40, %v50_v36 }
  0xe5   :  { %v129_v45 = vcombine.low %v123_v41, %v125_v43 }
  0xe6   :  { %v222_v46 = vcombine.low %v216_v42, %v218_v44 }
  0xe7   :  { %131 = vst [vmem:[#allocation5] sm:$0xff] %v129_v45 }
  0xe8   :  { %225 = vst [vmem:[#allocation5 + $0x8] sm:$0xff] %v222_v46 }
  0xe9   :  { %285 = shalt.err (!%p282_p9)
}
  0xea   :  { %s304_s2 = smov 128   ;;  %s305_s24 = smov 8  }
  0xeb   :  { %237 = dma.vmem_to_hbm [thread:$0]  %s232_s23, 256, %s341_s3, [#allocation4], %s304_s2, %s304_s2, %s305_s24  }
  0xec   :  { %296 = dma.done.wait [#allocation4], 256  }
  0xed   :  { %297 = vsyncadd [#allocation4], 4294967040 }
  0xee   :  { %241 = vsyncpa [#allocation3], 1 }
  0xef   :  { %242 = vsyncpa [#allocation4], 1 }

</bundles_post_ra>
